<compile_context>
chip_gen: v6e
topology: v6e:2x2x1
jax: 0.10.0
libtpu: 0.0.40
codegen_flags: <defaults>
</compile_context>

<pallas_src>
import functools

import jax
import jax.numpy as jnp
from jax.experimental import pallas as pl
from jax.experimental.pallas import tpu as pltpu


def _round_up(a: int, b: int) -> int:
    return (a + b - 1) // b * b


def _vmem_capacity_bytes() -> int:
    try:
        return int(pltpu.get_tpu_info().vmem_capacity_bytes)
    except Exception:
        return 64 * 1024 * 1024  # conservative default (v7x per-TC VMEM)


def _gin_agg_kernel(idx_ref, x_ref, w1t_ref, b1_ref, w2t_ref, b2_ref, o_ref):
    # idx_ref : [1, TK]  int32 (padded slots = -1)
    # x_ref   : [TK, Hp] bf16  (cast + padded in the wrapper)
    # w*t_ref : [Hp, Hp] bf16  ([in, out], pre-transposed -> no in-kernel .T)
    # b*_ref  : [1, Hp]  f32
    # o_ref   : [TM, Hp] f32   -- also the accumulator: its block index depends
    #           only on i, so it stays VMEM-resident across the k (node) axis.
    i = pl.program_id(0)          # segment / M tile (parallel)
    k = pl.program_id(1)          # node / reduction tile (arbitrary, last)
    tm = o_ref.shape[0]
    tk = x_ref.shape[0]

    @pl.when(k == 0)
    def _():
        o_ref[...] = jnp.zeros_like(o_ref)

    # Per-tile one-hot: shift the [1, TK] index row by -i*TM instead of adding
    # i*TM to the [TM, TK] iota (cheaper VPU work per step).  Padded (-1) and
    # out-of-tile indices never match.  0/1 is exact in bf16, so the scatter
    # matmul runs on the fast bf16 MXU path with f32 accumulation.
    idx_local = idx_ref[...] - i * tm                               # [1, TK]
    base = jax.lax.broadcasted_iota(jnp.int32, (tm, tk), 0)         # [TM, TK]
    one_hot = (base == idx_local).astype(jnp.bfloat16)

    o_ref[...] += jnp.dot(one_hot, x_ref[...],
                          preferred_element_type=jnp.float32)

    @pl.when(k == pl.num_programs(1) - 1)
    def _():
        agg = o_ref[...]                                            # [TM, Hp] f32
        h = jnp.maximum(
            jnp.dot(agg.astype(jnp.bfloat16), w1t_ref[...],
                    preferred_element_type=jnp.float32) + b1_ref[...], 0.0)
        y = jnp.dot(h.astype(jnp.bfloat16), w2t_ref[...],
                    preferred_element_type=jnp.float32) + b2_ref[...]
        o_ref[...] = y


@functools.partial(
    jax.jit,
    static_argnames=("num_segments", "single_buffer_weights", "vmem_capacity"))
def _gin_agg_impl(x, index, w1, b1, w2, b2, *, num_segments,
                  single_buffer_weights, vmem_capacity):
    N, H = x.shape
    M = int(num_segments)

    small_vmem = vmem_capacity < 100 * 1024 * 1024          # v7x (64 MiB / TC)
    # ~48 MiB usable on v7x, ~96 MiB on the 128-MiB parts (v5e / v6e).
    vmem_cap_limit = min(vmem_capacity * 3 // 4, 100 * 1024 * 1024)

    # ---- tile sizes -------------------------------------------------------
    Hp = _round_up(max(H, 128), 128)                        # lane dim

    # TM: larger TM => fewer HBM passes over x (the memory-bound phase).
    # v7x: keep >= 2 i-tiles so the "parallel" axis uses both TensorCores.
    # v5e/v6e: collapse toward a single i-tile.  Cap so the f32 output tile
    # (double-buffered) stays within ~1/4 of the VMEM budget.
    target_i_tiles = 2 if (small_vmem and M > 16) else 1
    tm_cap = max(128, (vmem_cap_limit // 4) // (2 * Hp * 4))
    tm_cap = max(8, (tm_cap // 8) * 8)
    TM = _round_up(-(-M // target_i_tiles), 8)
    TM = max(8, min(TM, tm_cap))
    Mp = _round_up(M, TM)

    # TK: scale with Hp so the streamed bf16 x tile is >= ~2 MiB (amortizes the
    # per-grid-step overhead), capped to ~1/3 of VMEM for its double buffer.
    tk_target = max(512, _round_up((2 * 1024 * 1024) // (Hp * 2), 128))
    tk_cap = max(128, ((vmem_cap_limit // 3) // (2 * Hp * 2) // 128) * 128)
    TK = min(tk_target, tk_cap)
    if N <= TK:
        TK = _round_up(max(N, 1), 128)
    Np = _round_up(N, TK)
    grid = (Mp // TM, Np // TK)

    # ---- pad / cast operands (wrapper-side plumbing only) -----------------
    # bf16 x: pad + cast fuse into one half-width copy; skip it when the input
    # is already tile-aligned.
    x_bf = x.astype(jnp.bfloat16)
    if (N, H) == (Np, Hp):
        x_p = x_bf
    else:
        x_p = jnp.zeros((Np, Hp), jnp.bfloat16).at[:N, :H].set(x_bf)
    # Padded node slots get index -1 -> never match any segment row.
    idx_p = jnp.full((1, Np), -1, jnp.int32).at[0, :N].set(
        index.astype(jnp.int32))
    # Pre-transpose weights to [in, out] and store bf16 (fast MXU epilogue).
    w1t_p = jnp.zeros((Hp, Hp), jnp.bfloat16).at[:H, :H].set(
        w1.T.astype(jnp.bfloat16))
    w2t_p = jnp.zeros((Hp, Hp), jnp.bfloat16).at[:H, :H].set(
        w2.T.astype(jnp.bfloat16))
    b1_p = jnp.zeros((1, Hp), jnp.float32).at[0, :H].set(b1.astype(jnp.float32))
    b2_p = jnp.zeros((1, Hp), jnp.float32).at[0, :H].set(b2.astype(jnp.float32))

    # Constant-index (VMEM-resident) blocks do not need double buffering.
    if single_buffer_weights:
        def _const_spec(shape):
            return pl.BlockSpec(shape, lambda i, k: (0, 0),
                                pipeline_mode=pl.Buffered(1))
    else:
        def _const_spec(shape):
            return pl.BlockSpec(shape, lambda i, k: (0, 0))

    # ---- VMEM budget & cost estimate --------------------------------------
    wb = 1 if single_buffer_weights else 2
    vmem_bytes = (
        2 * (TK * Hp * 2 + TK * 4)        # x + index tiles (double-buffered)
        + wb * 2 * Hp * Hp * 2            # W1^T, W2^T (bf16, resident)
        + wb * 2 * Hp * 4                 # b1, b2
        + 2 * TM * Hp * 4                 # output tile (doubles as accumulator)
    )
    vmem_limit = int(min(max(vmem_bytes * 3 // 2, 8 * 1024 * 1024),
                         vmem_cap_limit))

    n_i = Mp // TM
    cost = pl.CostEstimate(
        flops=2 * Mp * Np * Hp + 4 * Mp * Hp * Hp,
        transcendentals=0,
        bytes_accessed=n_i * (Np * Hp * 2 + Np * 4)   # x/idx re-read per i tile
        + 2 * Hp * Hp * 2 + 2 * Hp * 4                # weights + biases
        + Mp * Hp * 4,                                # output
    )

    out_p = pl.pallas_call(
        _gin_agg_kernel,
        out_shape=jax.ShapeDtypeStruct((Mp, Hp), jnp.float32),
        grid=grid,
        in_specs=[
            pl.BlockSpec((1, TK), lambda i, k: (0, k)),    # index row (per N tile)
            pl.BlockSpec((TK, Hp), lambda i, k: (k, 0)),   # x tile (bf16)
            _const_spec((Hp, Hp)),                         # W1^T (resident)
            _const_spec((1, Hp)),                          # b1   (resident)
            _const_spec((Hp, Hp)),                         # W2^T (resident)
            _const_spec((1, Hp)),                          # b2   (resident)
        ],
        out_specs=pl.BlockSpec((TM, Hp), lambda i, k: (i, 0)),
        compiler_params=pltpu.CompilerParams(
            dimension_semantics=("parallel", "arbitrary"),
            vmem_limit_bytes=vmem_limit,
        ),
        cost_estimate=cost,
    )(idx_p, x_p, w1t_p, b1_p, w2t_p, b2_p)

    return out_p[:M, :H]


def gin_agg(x, index, w1, b1, w2, b2, *, num_segments):
    """GinAgg forward: segment-sum of x over `index`, then Linear->ReLU->Linear.

    x: [N, H] f32, index: [N] int; w1/w2 are torch-Linear weights ([out, in]).
    """
    vmem_capacity = _vmem_capacity_bytes()
    try:
        out = _gin_agg_impl(x, index, w1, b1, w2, b2,
                            num_segments=num_segments,
                            single_buffer_weights=True,
                            vmem_capacity=vmem_capacity)
        return jax.block_until_ready(out)
    except Exception:
        # Fallback if single-buffered constant blocks (pl.Buffered(1)) are not
        # supported by this runtime: use default double buffering.
        out = _gin_agg_impl(x, index, w1, b1, w2, b2,
                            num_segments=num_segments,
                            single_buffer_weights=False,
                            vmem_capacity=vmem_capacity)
        return jax.block_until_ready(out)


def _xavier_uniform(key, fan_in, fan_out):
    limit = jnp.sqrt(6.0 / (fan_in + fan_out))
    return jax.random.uniform(key, (fan_out, fan_in), jnp.float32, -limit, limit)


if __name__ == "__main__":
    # Small, deterministic example: N=8 nodes, H=32 hidden, M=4 segments.
    N, H, M = 8, 32, 4
    key = jax.random.PRNGKey(0)
    kx, ki, k1, k2 = jax.random.split(key, 4)

    x = jax.random.normal(kx, (N, H), jnp.float32)
    index = jax.random.randint(ki, (N,), 0, M, jnp.int32)

    # Parameters (xavier-uniform like reset_parameters; torch Linear [out, in]).
    w1 = _xavier_uniform(k1, H, H)
    b1 = jnp.zeros((H,), jnp.float32)
    w2 = _xavier_uniform(k2, H, H)
    b2 = jnp.zeros((H,), jnp.float32)

    y = gin_agg(x, index, w1, b1, w2, b2, num_segments=M)
    y = jax.block_until_ready(y)

    # Pure-f32 reference (segment-sum via one-hot + MLP).
    one_hot_ref = (jnp.arange(M)[:, None] == index[None, :]).astype(jnp.float32)
    agg_ref = one_hot_ref @ x
    h_ref = jnp.maximum(agg_ref @ w1.T + b1, 0.0)
    y_ref = h_ref @ w2.T + b2

    assert y.shape == (M, H)
    # x and weights take the bf16 MXU path -> relaxed tolerance vs pure-f32 ref.
    assert jnp.allclose(y, y_ref, atol=5e-2, rtol=5e-2), "mismatch vs reference"

    print("KERNEL_OK")
</pallas_src>

<mosaic_0001>
module attributes {stable_mosaic.version = 11 : i64} {
  func.func @_gin_agg_kernel(%arg0: i32, %arg1: i32, %arg2: memref<1x128xi32, #tpu.memory_space<vmem>>, %arg3: memref<128x128xbf16, #tpu.memory_space<vmem>>, %arg4: memref<128x128xbf16, #tpu.memory_space<vmem>>, %arg5: memref<1x128xf32, #tpu.memory_space<vmem>>, %arg6: memref<128x128xbf16, #tpu.memory_space<vmem>>, %arg7: memref<1x128xf32, #tpu.memory_space<vmem>>, %arg8: memref<8x128xf32, #tpu.memory_space<vmem>>) attributes {dimension_semantics = [#tpu.dimension_semantics<parallel>, #tpu.dimension_semantics<arbitrary>], iteration_bounds = array<i64: 1, 1>, scalar_prefetch = 0 : i64, scratch_operands = 0 : i64, tpu.core_type = #tpu.core_type<tc>, window_params = [{transform_indices = @transform_0, window_bounds = array<i64: 1, 128>}, {transform_indices = @transform_1, window_bounds = array<i64: 128, 128>}, {pipeline_mode = #tpu.pipeline_mode<synchronous>, transform_indices = @transform_2, window_bounds = array<i64: 128, 128>}, {pipeline_mode = #tpu.pipeline_mode<synchronous>, transform_indices = @transform_3, window_bounds = array<i64: 1, 128>}, {pipeline_mode = #tpu.pipeline_mode<synchronous>, transform_indices = @transform_4, window_bounds = array<i64: 128, 128>}, {pipeline_mode = #tpu.pipeline_mode<synchronous>, transform_indices = @transform_5, window_bounds = array<i64: 1, 128>}, {transform_indices = @transform_6, window_bounds = array<i64: 8, 128>}]} {
    %c0_i32 = arith.constant 0 : i32
    %0 = arith.cmpi eq, %arg1, %c0_i32 : i32
    %1 = arith.extui %0 : i1 to i32
    %c0_i32_0 = arith.constant 0 : i32
    %2 = arith.cmpi ne, %1, %c0_i32_0 : i32
    scf.if %2 {
      %cst_10 = arith.constant 0.000000e+00 : f32
      %21 = vector.broadcast %cst_10 : f32 to vector<8x128xf32>
      %c0_11 = arith.constant 0 : index
      %c0_12 = arith.constant 0 : index
      %22 = vector.load %arg8[%c0_11, %c0_12] : memref<8x128xf32, #tpu.memory_space<vmem>>, vector<8x128xf32>
      tpu.vector_store %arg8[%c0_11, %c0_12], %21 {strides = array<i32>} : memref<8x128xf32, #tpu.memory_space<vmem>>, vector<8x128xf32>,
    } else {
    }
    %c0 = arith.constant 0 : index
    %c0_1 = arith.constant 0 : index
    %3 = vector.load %arg2[%c0, %c0_1] : memref<1x128xi32, #tpu.memory_space<vmem>>, vector<1x128xi32>
    %c8_i32 = arith.constant 8 : i32
    %4 = arith.muli %arg0, %c8_i32 : i32
    %5 = vector.broadcast %4 : i32 to vector<1x128xi32>
    %6 = arith.subi %3, %5 : vector<1x128xi32>
    %7 = tpu.iota {dimensions = array<i32: 0>} : vector<8x128xi32>
    %8 = vector.broadcast %6 : vector<1x128xi32> to vector<8x128xi32>
    %9 = arith.cmpi eq, %7, %8 : vector<8x128xi32>
    %10 = arith.extui %9 : vector<8x128xi1> to vector<8x128xi32>
    %11 = arith.sitofp %10 : vector<8x128xi32> to vector<8x128xf32>
    %12 = arith.truncf %11 : vector<8x128xf32> to vector<8x128xbf16>
    %c0_2 = arith.constant 0 : index
    %c0_3 = arith.constant 0 : index
    %13 = vector.load %arg8[%c0_2, %c0_3] : memref<8x128xf32, #tpu.memory_space<vmem>>, vector<8x128xf32>
    %c0_4 = arith.constant 0 : index
    %c0_5 = arith.constant 0 : index
    %14 = vector.load %arg3[%c0_4, %c0_5] : memref<128x128xbf16, #tpu.memory_space<vmem>>, vector<128x128xbf16>
    %cst = arith.constant dense<0.000000e+00> : vector<8x128xf32>
    %15 = tpu.matmul %12, %14, %cst {dimension_numbers = #tpu.dot_dimension_numbers<[1], [0], [0], [1], [0, 0, 1, 1], [], []>} : vector<8x128xbf16>, vector<128x128xbf16>, vector<8x128xf32> -> vector<8x128xf32>
    %16 = arith.addf %13, %15 : vector<8x128xf32>
    %c0_6 = arith.constant 0 : index
    %c0_7 = arith.constant 0 : index
    %17 = vector.load %arg8[%c0_6, %c0_7] : memref<8x128xf32, #tpu.memory_space<vmem>>, vector<8x128xf32>
    tpu.vector_store %arg8[%c0_6, %c0_7], %16 {strides = array<i32>} : memref<8x128xf32, #tpu.memory_space<vmem>>, vector<8x128xf32>,
    %c0_i32_8 = arith.constant 0 : i32
    %18 = arith.cmpi eq, %arg1, %c0_i32_8 : i32
    %19 = arith.extui %18 : i1 to i32
    %c0_i32_9 = arith.constant 0 : i32
    %20 = arith.cmpi ne, %19, %c0_i32_9 : i32
    scf.if %20 {
      %c0_10 = arith.constant 0 : index
      %c0_11 = arith.constant 0 : index
      %21 = vector.load %arg8[%c0_10, %c0_11] : memref<8x128xf32, #tpu.memory_space<vmem>>, vector<8x128xf32>
      %22 = arith.truncf %21 : vector<8x128xf32> to vector<8x128xbf16>
      %c0_12 = arith.constant 0 : index
      %c0_13 = arith.constant 0 : index
      %23 = vector.load %arg4[%c0_12, %c0_13] : memref<128x128xbf16, #tpu.memory_space<vmem>>, vector<128x128xbf16>
      %cst_14 = arith.constant dense<0.000000e+00> : vector<8x128xf32>
      %24 = tpu.matmul %22, %23, %cst_14 {dimension_numbers = #tpu.dot_dimension_numbers<[1], [0], [0], [1], [0, 0, 1, 1], [], []>} : vector<8x128xbf16>, vector<128x128xbf16>, vector<8x128xf32> -> vector<8x128xf32>
      %c0_15 = arith.constant 0 : index
      %c0_16 = arith.constant 0 : index
      %25 = vector.load %arg5[%c0_15, %c0_16] : memref<1x128xf32, #tpu.memory_space<vmem>>, vector<1x128xf32>
      %26 = vector.broadcast %25 : vector<1x128xf32> to vector<8x128xf32>
      %27 = arith.addf %24, %26 : vector<8x128xf32>
      %cst_17 = arith.constant 0.000000e+00 : f32
      %28 = vector.broadcast %cst_17 : f32 to vector<8x128xf32>
      %29 = arith.maximumf %27, %28 : vector<8x128xf32>
      %30 = arith.truncf %29 : vector<8x128xf32> to vector<8x128xbf16>
      %c0_18 = arith.constant 0 : index
      %c0_19 = arith.constant 0 : index
      %31 = vector.load %arg6[%c0_18, %c0_19] : memref<128x128xbf16, #tpu.memory_space<vmem>>, vector<128x128xbf16>
      %cst_20 = arith.constant dense<0.000000e+00> : vector<8x128xf32>
      %32 = tpu.matmul %30, %31, %cst_20 {dimension_numbers = #tpu.dot_dimension_numbers<[1], [0], [0], [1], [0, 0, 1, 1], [], []>} : vector<8x128xbf16>, vector<128x128xbf16>, vector<8x128xf32> -> vector<8x128xf32>
      %c0_21 = arith.constant 0 : index
      %c0_22 = arith.constant 0 : index
      %33 = vector.load %arg7[%c0_21, %c0_22] : memref<1x128xf32, #tpu.memory_space<vmem>>, vector<1x128xf32>
      %34 = vector.broadcast %33 : vector<1x128xf32> to vector<8x128xf32>
      %35 = arith.addf %32, %34 : vector<8x128xf32>
      %c0_23 = arith.constant 0 : index
      %c0_24 = arith.constant 0 : index
      %36 = vector.load %arg8[%c0_23, %c0_24] : memref<8x128xf32, #tpu.memory_space<vmem>>, vector<8x128xf32>
      tpu.vector_store %arg8[%c0_23, %c0_24], %35 {strides = array<i32>} : memref<8x128xf32, #tpu.memory_space<vmem>>, vector<8x128xf32>,
    } else {
    }
    return
  }
  func.func @transform_0(%arg0: i32, %arg1: i32) -> (i32, i32) {
    %c0_i32 = arith.constant 0 : i32
    %c0_i32_0 = arith.constant 0 : i32
    return %c0_i32, %arg1 : i32, i32
  }
  func.func @transform_1(%arg0: i32, %arg1: i32) -> (i32, i32) {
    %c0_i32 = arith.constant 0 : i32
    %c0_i32_0 = arith.constant 0 : i32
    return %arg1, %c0_i32 : i32, i32
  }
  func.func @transform_2(%arg0: i32, %arg1: i32) -> (i32, i32) {
    %c0_i32 = arith.constant 0 : i32
    %c0_i32_0 = arith.constant 0 : i32
    %c0_i32_1 = arith.constant 0 : i32
    return %c0_i32, %c0_i32_0 : i32, i32
  }
  func.func @transform_3(%arg0: i32, %arg1: i32) -> (i32, i32) {
    %c0_i32 = arith.constant 0 : i32
    %c0_i32_0 = arith.constant 0 : i32
    %c0_i32_1 = arith.constant 0 : i32
    return %c0_i32, %c0_i32_0 : i32, i32
  }
  func.func @transform_4(%arg0: i32, %arg1: i32) -> (i32, i32) {
    %c0_i32 = arith.constant 0 : i32
    %c0_i32_0 = arith.constant 0 : i32
    %c0_i32_1 = arith.constant 0 : i32
    return %c0_i32, %c0_i32_0 : i32, i32
  }
  func.func @transform_5(%arg0: i32, %arg1: i32) -> (i32, i32) {
    %c0_i32 = arith.constant 0 : i32
    %c0_i32_0 = arith.constant 0 : i32
    %c0_i32_1 = arith.constant 0 : i32
    return %c0_i32, %c0_i32_0 : i32, i32
  }
  func.func @transform_6(%arg0: i32, %arg1: i32) -> (i32, i32) {
    %c0_i32 = arith.constant 0 : i32
    %c0_i32_0 = arith.constant 0 : i32
    return %arg0, %c0_i32 : i32, i32
  }
}

module attributes {stable_mosaic.version = 11 : i64} {
  func.func @_gin_agg_kernel(%arg0: i32, %arg1: i32, %arg2: memref<1x128xi32, #tpu.memory_space<vmem>>, %arg3: memref<128x128xbf16, #tpu.memory_space<vmem>>, %arg4: memref<128x128xbf16, #tpu.memory_space<vmem>>, %arg5: memref<1x128xf32, #tpu.memory_space<vmem>>, %arg6: memref<128x128xbf16, #tpu.memory_space<vmem>>, %arg7: memref<1x128xf32, #tpu.memory_space<vmem>>, %arg8: memref<8x128xf32, #tpu.memory_space<vmem>>) attributes {dimension_semantics = [#tpu.dimension_semantics<parallel>, #tpu.dimension_semantics<arbitrary>], iteration_bounds = array<i64: 1, 1>, scalar_prefetch = 0 : i64, scratch_operands = 0 : i64, tpu.core_type = #tpu.core_type<tc>, window_params = [{transform_indices = @transform_0, window_bounds = array<i64: 1, 128>}, {transform_indices = @transform_1, window_bounds = array<i64: 128, 128>}, {pipeline_mode = #tpu.pipeline_mode<synchronous>, transform_indices = @transform_2, window_bounds = array<i64: 128, 128>}, {pipeline_mode = #tpu.pipeline_mode<synchronous>, transform_indices = @transform_3, window_bounds = array<i64: 1, 128>}, {pipeline_mode = #tpu.pipeline_mode<synchronous>, transform_indices = @transform_4, window_bounds = array<i64: 128, 128>}, {pipeline_mode = #tpu.pipeline_mode<synchronous>, transform_indices = @transform_5, window_bounds = array<i64: 1, 128>}, {transform_indices = @transform_6, window_bounds = array<i64: 8, 128>}]} {
    %c0_i32 = arith.constant 0 : i32
    %0 = arith.cmpi eq, %arg1, %c0_i32 : i32
    %1 = arith.extui %0 : i1 to i32
    %c0_i32_0 = arith.constant 0 : i32
    %2 = arith.cmpi ne, %1, %c0_i32_0 : i32
    scf.if %2 {
      %cst_10 = arith.constant 0.000000e+00 : f32
      %21 = vector.broadcast %cst_10 : f32 to vector<8x128xf32>
      %c0_11 = arith.constant 0 : index
      %c0_12 = arith.constant 0 : index
      %22 = vector.load %arg8[%c0_11, %c0_12] : memref<8x128xf32, #tpu.memory_space<vmem>>, vector<8x128xf32>
      tpu.vector_store %arg8[%c0_11, %c0_12], %21 {strides = array<i32>} : memref<8x128xf32, #tpu.memory_space<vmem>>, vector<8x128xf32>,
    } else {
    }
    %c0 = arith.constant 0 : index
    %c0_1 = arith.constant 0 : index
    %3 = vector.load %arg2[%c0, %c0_1] : memref<1x128xi32, #tpu.memory_space<vmem>>, vector<1x128xi32>
    %c8_i32 = arith.constant 8 : i32
    %4 = arith.muli %arg0, %c8_i32 : i32
    %5 = vector.broadcast %4 : i32 to vector<1x128xi32>
    %6 = arith.subi %3, %5 : vector<1x128xi32>
    %7 = tpu.iota {dimensions = array<i32: 0>} : vector<8x128xi32>
    %8 = vector.broadcast %6 : vector<1x128xi32> to vector<8x128xi32>
    %9 = arith.cmpi eq, %7, %8 : vector<8x128xi32>
    %10 = arith.extui %9 : vector<8x128xi1> to vector<8x128xi32>
    %11 = arith.sitofp %10 : vector<8x128xi32> to vector<8x128xf32>
    %12 = arith.truncf %11 : vector<8x128xf32> to vector<8x128xbf16>
    %c0_2 = arith.constant 0 : index
    %c0_3 = arith.constant 0 : index
    %13 = vector.load %arg8[%c0_2, %c0_3] : memref<8x128xf32, #tpu.memory_space<vmem>>, vector<8x128xf32>
    %c0_4 = arith.constant 0 : index
    %c0_5 = arith.constant 0 : index
    %14 = vector.load %arg3[%c0_4, %c0_5] : memref<128x128xbf16, #tpu.memory_space<vmem>>, vector<128x128xbf16>
    %cst = arith.constant dense<0.000000e+00> : vector<8x128xf32>
    %15 = tpu.matmul %12, %14, %cst {dimension_numbers = #tpu.dot_dimension_numbers<[1], [0], [0], [1], [0, 0, 1, 1], [], []>} : vector<8x128xbf16>, vector<128x128xbf16>, vector<8x128xf32> -> vector<8x128xf32>
    %16 = arith.addf %13, %15 : vector<8x128xf32>
    %c0_6 = arith.constant 0 : index
    %c0_7 = arith.constant 0 : index
    %17 = vector.load %arg8[%c0_6, %c0_7] : memref<8x128xf32, #tpu.memory_space<vmem>>, vector<8x128xf32>
    tpu.vector_store %arg8[%c0_6, %c0_7], %16 {strides = array<i32>} : memref<8x128xf32, #tpu.memory_space<vmem>>, vector<8x128xf32>,
    %c0_i32_8 = arith.constant 0 : i32
    %18 = arith.cmpi eq, %arg1, %c0_i32_8 : i32
    %19 = arith.extui %18 : i1 to i32
    %c0_i32_9 = arith.constant 0 : i32
    %20 = arith.cmpi ne, %19, %c0_i32_9 : i32
    scf.if %20 {
      %c0_10 = arith.constant 0 : index
      %c0_11 = arith.constant 0 : index
      %21 = vector.load %arg8[%c0_10, %c0_11] : memref<8x128xf32, #tpu.memory_space<vmem>>, vector<8x128xf32>
      %22 = arith.truncf %21 : vector<8x128xf32> to vector<8x128xbf16>
      %c0_12 = arith.constant 0 : index
      %c0_13 = arith.constant 0 : index
      %23 = vector.load %arg4[%c0_12, %c0_13] : memref<128x128xbf16, #tpu.memory_space<vmem>>, vector<128x128xbf16>
      %cst_14 = arith.constant dense<0.000000e+00> : vector<8x128xf32>
      %24 = tpu.matmul %22, %23, %cst_14 {dimension_numbers = #tpu.dot_dimension_numbers<[1], [0], [0], [1], [0, 0, 1, 1], [], []>} : vector<8x128xbf16>, vector<128x128xbf16>, vector<8x128xf32> -> vector<8x128xf32>
      %c0_15 = arith.constant 0 : index
      %c0_16 = arith.constant 0 : index
      %25 = vector.load %arg5[%c0_15, %c0_16] : memref<1x128xf32, #tpu.memory_space<vmem>>, vector<1x128xf32>
      %26 = vector.broadcast %25 : vector<1x128xf32> to vector<8x128xf32>
      %27 = arith.addf %24, %26 : vector<8x128xf32>
      %cst_17 = arith.constant 0.000000e+00 : f32
      %28 = vector.broadcast %cst_17 : f32 to vector<8x128xf32>
      %29 = arith.maximumf %27, %28 : vector<8x128xf32>
      %30 = arith.truncf %29 : vector<8x128xf32> to vector<8x128xbf16>
      %c0_18 = arith.constant 0 : index
      %c0_19 = arith.constant 0 : index
      %31 = vector.load %arg6[%c0_18, %c0_19] : memref<128x128xbf16, #tpu.memory_space<vmem>>, vector<128x128xbf16>
      %cst_20 = arith.constant dense<0.000000e+00> : vector<8x128xf32>
      %32 = tpu.matmul %30, %31, %cst_20 {dimension_numbers = #tpu.dot_dimension_numbers<[1], [0], [0], [1], [0, 0, 1, 1], [], []>} : vector<8x128xbf16>, vector<128x128xbf16>, vector<8x128xf32> -> vector<8x128xf32>
      %c0_21 = arith.constant 0 : index
      %c0_22 = arith.constant 0 : index
      %33 = vector.load %arg7[%c0_21, %c0_22] : memref<1x128xf32, #tpu.memory_space<vmem>>, vector<1x128xf32>
      %34 = vector.broadcast %33 : vector<1x128xf32> to vector<8x128xf32>
      %35 = arith.addf %32, %34 : vector<8x128xf32>
      %c0_23 = arith.constant 0 : index
      %c0_24 = arith.constant 0 : index
      %36 = vector.load %arg8[%c0_23, %c0_24] : memref<8x128xf32, #tpu.memory_space<vmem>>, vector<8x128xf32>
      tpu.vector_store %arg8[%c0_23, %c0_24], %35 {strides = array<i32>} : memref<8x128xf32, #tpu.memory_space<vmem>>, vector<8x128xf32>,
    } else {
    }
    return
  }
  func.func @transform_0(%arg0: i32, %arg1: i32) -> (i32, i32) {
    %c0_i32 = arith.constant 0 : i32
    %c0_i32_0 = arith.constant 0 : i32
    return %c0_i32, %arg1 : i32, i32
  }
  func.func @transform_1(%arg0: i32, %arg1: i32) -> (i32, i32) {
    %c0_i32 = arith.constant 0 : i32
    %c0_i32_0 = arith.constant 0 : i32
    return %arg1, %c0_i32 : i32, i32
  }
  func.func @transform_2(%arg0: i32, %arg1: i32) -> (i32, i32) {
    %c0_i32 = arith.constant 0 : i32
    %c0_i32_0 = arith.constant 0 : i32
    %c0_i32_1 = arith.constant 0 : i32
    return %c0_i32, %c0_i32_0 : i32, i32
  }
  func.func @transform_3(%arg0: i32, %arg1: i32) -> (i32, i32) {
    %c0_i32 = arith.constant 0 : i32
    %c0_i32_0 = arith.constant 0 : i32
    %c0_i32_1 = arith.constant 0 : i32
    return %c0_i32, %c0_i32_0 : i32, i32
  }
  func.func @transform_4(%arg0: i32, %arg1: i32) -> (i32, i32) {
    %c0_i32 = arith.constant 0 : i32
    %c0_i32_0 = arith.constant 0 : i32
    %c0_i32_1 = arith.constant 0 : i32
    return %c0_i32, %c0_i32_0 : i32, i32
  }
  func.func @transform_5(%arg0: i32, %arg1: i32) -> (i32, i32) {
    %c0_i32 = arith.constant 0 : i32
    %c0_i32_0 = arith.constant 0 : i32
    %c0_i32_1 = arith.constant 0 : i32
    return %c0_i32, %c0_i32_0 : i32, i32
  }
  func.func @transform_6(%arg0: i32, %arg1: i32) -> (i32, i32) {
    %c0_i32 = arith.constant 0 : i32
    %c0_i32_0 = arith.constant 0 : i32
    return %arg0, %c0_i32 : i32, i32
  }
}

</mosaic_0001>

<bundles_post_ra>
// kernel: _gin_agg_impl.1
= control target key start
LH: loop header
LB: loop body
LE: loop exit
PB: predicated region body
PF: predicated region fallthrough
CT: control target
= control target key end

     0   :  { %v528_v0 = vmov 0.0   ;;  %vm529_vm0 = vmmov 0   ;;  %v33_v10 = vlaneseq  ;;  %v530_v17 = vmov 1.0|1.0   ;;  %s680_s1 = inlined_call_operand.vmem [shape: bf16[128,128], index: 1, kind: input, shape index: {}]   ;;  %s681_s2 = inlined_call_operand.vmem [shape: bf16[128,128], index: 2, kind: input, shape index: {}]   ;;  %s682_s0 = inlined_call_operand.vmem [shape: s32[1,128], index: 0, kind: input, shape index: {}]   ;;  %s683_s4 = inlined_call_operand.vmem [shape: bf16[128,128], index: 4, kind: input, shape index: {}]   ;;  %s684_s3 = inlined_call_operand.vmem [shape: f32[1,128], index: 3, kind: input, shape index: {}]   ;;  %s685_s5 = inlined_call_operand.vmem [shape: f32[1,128], index: 5, kind: input, shape index: {}]   ;;  %s686_s6 = inlined_call_operand.vmem [shape: f32[8,128], index: 6, kind: output, shape index: {}]  }
   0x1   :  { %441 = vmatprep.subr.bf16.mxu0 %v528_v0  ;;  %v504_v1 = vld [vmem:[%s680_s1 + $0x38] sm:$0xff]   ;;  %457 = vmatprep.mubr.msk.bf16.mxu0 %vm529_vm0, %v528_v0  ;;  %v505_v2 = vld [vmem:[%s680_s1 + $0x30] sm:$0xff]   ;;  %v506_v3 = vld [vmem:[%s680_s1 + $0x28] sm:$0xff]  }
   0x2   :  { %461 = vmatprep.subr.bf16.mxu1 %v528_v0  ;;  %477 = vmatprep.mubr.msk.bf16.mxu1 %vm529_vm0, %v528_v0  ;;  %v512_v4 = vld [vmem:[%s681_s2 + $0x38] sm:$0xff]   ;;  %v507_v5 = vld [vmem:[%s680_s1 + $0x20] sm:$0xff]   ;;  %v513_v6 = vld [vmem:[%s681_s2 + $0x30] sm:$0xff]   ;;  %v34_v13 = vshrl.u32 %v33_v10, 7 }
   0x3   :  { %442 = vmatpush3.bf16.msra.mxu0 %v504_v1  ;;  %462 = vmatpush3.bf16.msra.mxu1 %v512_v4  ;;  %v508_v7 = vld [vmem:[%s680_s1 + $0x18] sm:$0xff]   ;;  %v514_v8 = vld [vmem:[%s681_s2 + $0x28] sm:$0xff]   ;;  %v509_v9 = vld [vmem:[%s680_s1 + $0x10] sm:$0xff]  }
   0x4   :  { %443 = vmatprep.subr.bf16.mxu0 %v528_v0  ;;  %463 = vmatprep.subr.bf16.mxu1 %v528_v0  ;;  %v515_v11 = vld [vmem:[%s681_s2 + $0x20] sm:$0xff]   ;;  %v510_v12 = vld [vmem:[%s680_s1 + $0x8] sm:$0xff]   ;;  %v516_v14 = vld [vmem:[%s681_s2 + $0x18] sm:$0xff]  }
   0x5   :  { %v384_v15 = vld [vmem:[%s682_s0] ss:$0 sm:$0xff]  ;;  %v517_v18 = vld [vmem:[%s681_s2 + $0x10] sm:$0xff]   ;;  %v518_v19 = vld [vmem:[%s681_s2 + $0x8] sm:$0xff]  }
   0x6   :  { %v511_v16 = vld [vmem:[%s680_s1] sm:$0xff]   ;;  %vm39_vm1 = vcmp.eq.s32.totalorder %v34_v13, %v384_v15  ;;  %v520_v21 = vld [vmem:[%s683_s4 + $0x38] sm:$0xff]   ;;  %v521_v22 = vld [vmem:[%s683_s4 + $0x30] sm:$0xff]  }
   0x7   :  { %444 = vmatpush3.bf16.msra.mxu0 %v505_v2  ;;  %464 = vmatpush3.bf16.msra.mxu1 %v513_v6  ;;  %vm394_vm2 = vmpackc.low %vm39_vm1, %vm39_vm1  ;;  %v519_v20 = vld [vmem:[%s681_s2] sm:$0xff]   ;;  %v522_v23 = vld [vmem:[%s683_s4 + $0x28] sm:$0xff]  }
   0x8   :  { %445 = vmatprep.subr.bf16.mxu0 %v528_v0  ;;  %465 = vmatprep.subr.bf16.mxu1 %v528_v0  ;;  %v523_v24 = vld [vmem:[%s683_s4 + $0x20] sm:$0xff]   ;;  %v524_v25 = vld [vmem:[%s683_s4 + $0x18] sm:$0xff]   ;;  %v525_v26 = vld [vmem:[%s683_s4 + $0x10] sm:$0xff]  }
   0x9   :  { %v526_v32 = vld [vmem:[%s683_s4 + $0x8] sm:$0xff]   ;;  %v527_v33 = vld [vmem:[%s683_s4] sm:$0xff]  }
   0xa   :  { %v396_v34 = vld [vmem:[%s684_s3] ss:$0 sm:$0xff] }
   0xb   :  { %446 = vmatpush3.bf16.msra.mxu0 %v506_v3  ;;  %466 = vmatpush3.bf16.msra.mxu1 %v514_v8  ;;  %v405_v42 = vld [vmem:[%s685_s5] ss:$0 sm:$0xff] }
   0xc   :  { %447 = vmatprep.subr.bf16.mxu0 %v528_v0  ;;  %467 = vmatprep.subr.bf16.mxu1 %v528_v0 }
   0xf   :  { %448 = vmatpush3.bf16.msra.mxu0 %v507_v5  ;;  %468 = vmatpush3.bf16.msra.mxu1 %v515_v11 }
  0x10   :  { %449 = vmatprep.subr.bf16.mxu0 %v528_v0  ;;  %469 = vmatprep.subr.bf16.mxu1 %v528_v0 }
  0x13   :  { %450 = vmatpush3.bf16.msra.mxu0 %v508_v7  ;;  %470 = vmatpush3.bf16.msra.mxu1 %v516_v14 }
  0x14   :  { %451 = vmatprep.subr.bf16.mxu0 %v528_v0  ;;  %471 = vmatprep.subr.bf16.mxu1 %v528_v0 }
  0x17   :  { %452 = vmatpush3.bf16.msra.mxu0 %v509_v9  ;;  %472 = vmatpush3.bf16.msra.mxu1 %v517_v18 }
  0x18   :  { %453 = vmatprep.subr.bf16.mxu0 %v528_v0  ;;  %473 = vmatprep.subr.bf16.mxu1 %v528_v0 }
  0x1b   :  { %454 = vmatpush3.bf16.msra.mxu0 %v510_v12  ;;  %474 = vmatpush3.bf16.msra.mxu1 %v518_v19 }
  0x1c   :  { %455 = vmatprep.subr.bf16.mxu0 %v528_v0  ;;  %475 = vmatprep.subr.bf16.mxu1 %v528_v0 }
  0x1f   :  { %456 = vmatpush3.bf16.msra.mxu0 %v511_v16  ;;  %476 = vmatpush3.bf16.msra.mxu1 %v519_v20 }
  0x20   :  { %481 = vmatprep.subr.bf16.mxu0 %v528_v0 }
  0x22   :  { %458 = vmatmul.mubr.msk.bf16.vlgmr.msra.gmra.mxu0 %vm394_vm2, %v530_v17 }
  0x23   :  { %497 = vmatprep.mubr.msk.bf16.mxu0 %vm529_vm0, %v528_v0  ;;  %482 = vmatpush3.bf16.msra.mxu0 %v520_v21 }
  0x24   :  { %483 = vmatprep.subr.bf16.mxu0 %v528_v0 }
  0x27   :  { %484 = vmatpush3.bf16.msra.mxu0 %v521_v22 }
  0x28   :  { %485 = vmatprep.subr.bf16.mxu0 %v528_v0 }
  0x2b   :  { %486 = vmatpush3.bf16.msra.mxu0 %v522_v23 }
  0x2c   :  { %487 = vmatprep.subr.bf16.mxu0 %v528_v0 }
  0x2f   :  { %488 = vmatpush3.bf16.msra.mxu0 %v523_v24 }
  0x30   :  { %489 = vmatprep.subr.bf16.mxu0 %v528_v0 }
  0x33   :  { %490 = vmatpush3.bf16.msra.mxu0 %v524_v25 }
  0x34   :  { %491 = vmatprep.subr.bf16.mxu0 %v528_v0 }
  0x37   :  { %492 = vmatpush3.bf16.msra.mxu0 %v525_v26 }
  0x38   :  { %493 = vmatprep.subr.bf16.mxu0 %v528_v0 }
  0x3b   :  { %494 = vmatpush3.bf16.msra.mxu0 %v526_v32 }
  0x3c   :  { %495 = vmatprep.subr.bf16.mxu0 %v528_v0 }
  0x3f   :  { %496 = vmatpush3.bf16.msra.mxu0 %v527_v33 }
  0xe2   :  { %v142_v27 = vpop.f32.mrf.mxu0 }
  0xe3   :  { %v154_v29 = vpack.c.bf16 %v142_v27, %v142_v27 }
  0xe4   :  { %v459_v28 = vpop.f32.mrf.mxu0 }
  0xe5   :  { %478 = vmatmul.mubr.bf16.vlgmr.msra.gmra.mxu1 %v154_v29 }
  0xe6   :  { %v145_v30 = vpop.f32.mrf.mxu0 }
  0xe8   :  { %v460_v31 = vpop.f32.mrf.mxu0 }
 0x1a5   :  { %v260_v35 = vpop.f32.mrf.mxu1 }
 0x1a6   :  { %v261_v36 = vadd.f32 %v396_v34, %v260_v35 }
 0x1a7   :  { %v479_v37 = vpop.f32.mrf.mxu1 }
 0x1a8   :  { %v266_v38 = vmax.f32 %v261_v36, 0.0 }
 0x1a9   :  { %v263_v39 = vpop.f32.mrf.mxu1 }
 0x1aa   :  { %v267_v40 = vpack.c.bf16 %v266_v38, %v266_v38 }
 0x1ab   :  { %v480_v41 = vpop.f32.mrf.mxu1 }
 0x1ac   :  { %498 = vmatmul.mubr.bf16.vlgmr.msra.gmra.mxu0 %v267_v40 }
 0x26c   :  { %v373_v43 = vpop.f32.mrf.mxu0 }
 0x26d   :  { %v374_v44 = vadd.f32 %v405_v42, %v373_v43 }
 0x26e   :  { %v499_v45 = vpop.f32.mrf.mxu0 }
 0x26f   :  { %379 = vst [vmem:[%s686_s6] sm:$0xff] %v374_v44 }
 0x270   :  { %v376_v46 = vpop.f32.mrf.mxu0 }
 0x272   :  { %v500_v47 = vpop.f32.mrf.mxu0 }

// kernel: _gin_agg_impl.1
= control target key start
LH: loop header
LB: loop body
LE: loop exit
PB: predicated region body
PF: predicated region fallthrough
CT: control target
= control target key end

     0   :  { %v528_v0 = vmov 0.0   ;;  %vm529_vm0 = vmmov 0   ;;  %v33_v10 = vlaneseq  ;;  %v530_v17 = vmov 1.0|1.0   ;;  %s680_s1 = inlined_call_operand.vmem [shape: bf16[128,128], index: 1, kind: input, shape index: {}]   ;;  %s681_s2 = inlined_call_operand.vmem [shape: bf16[128,128], index: 2, kind: input, shape index: {}]   ;;  %s682_s0 = inlined_call_operand.vmem [shape: s32[1,128], index: 0, kind: input, shape index: {}]   ;;  %s683_s4 = inlined_call_operand.vmem [shape: bf16[128,128], index: 4, kind: input, shape index: {}]   ;;  %s684_s3 = inlined_call_operand.vmem [shape: f32[1,128], index: 3, kind: input, shape index: {}]   ;;  %s685_s5 = inlined_call_operand.vmem [shape: f32[1,128], index: 5, kind: input, shape index: {}]   ;;  %s686_s6 = inlined_call_operand.vmem [shape: f32[8,128], index: 6, kind: output, shape index: {}]  }
   0x1   :  { %441 = vmatprep.subr.bf16.mxu0 %v528_v0  ;;  %v504_v1 = vld [vmem:[%s680_s1 + $0x38] sm:$0xff]   ;;  %457 = vmatprep.mubr.msk.bf16.mxu0 %vm529_vm0, %v528_v0  ;;  %v505_v2 = vld [vmem:[%s680_s1 + $0x30] sm:$0xff]   ;;  %v506_v3 = vld [vmem:[%s680_s1 + $0x28] sm:$0xff]  }
   0x2   :  { %461 = vmatprep.subr.bf16.mxu1 %v528_v0  ;;  %477 = vmatprep.mubr.msk.bf16.mxu1 %vm529_vm0, %v528_v0  ;;  %v512_v4 = vld [vmem:[%s681_s2 + $0x38] sm:$0xff]   ;;  %v507_v5 = vld [vmem:[%s680_s1 + $0x20] sm:$0xff]   ;;  %v513_v6 = vld [vmem:[%s681_s2 + $0x30] sm:$0xff]   ;;  %v34_v13 = vshrl.u32 %v33_v10, 7 }
   0x3   :  { %442 = vmatpush3.bf16.msra.mxu0 %v504_v1  ;;  %462 = vmatpush3.bf16.msra.mxu1 %v512_v4  ;;  %v508_v7 = vld [vmem:[%s680_s1 + $0x18] sm:$0xff]   ;;  %v514_v8 = vld [vmem:[%s681_s2 + $0x28] sm:$0xff]   ;;  %v509_v9 = vld [vmem:[%s680_s1 + $0x10] sm:$0xff]  }
   0x4   :  { %443 = vmatprep.subr.bf16.mxu0 %v528_v0  ;;  %463 = vmatprep.subr.bf16.mxu1 %v528_v0  ;;  %v515_v11 = vld [vmem:[%s681_s2 + $0x20] sm:$0xff]   ;;  %v510_v12 = vld [vmem:[%s680_s1 + $0x8] sm:$0xff]   ;;  %v516_v14 = vld [vmem:[%s681_s2 + $0x18] sm:$0xff]  }
   0x5   :  { %v384_v15 = vld [vmem:[%s682_s0] ss:$0 sm:$0xff]  ;;  %v517_v18 = vld [vmem:[%s681_s2 + $0x10] sm:$0xff]   ;;  %v518_v19 = vld [vmem:[%s681_s2 + $0x8] sm:$0xff]  }
   0x6   :  { %v511_v16 = vld [vmem:[%s680_s1] sm:$0xff]   ;;  %vm39_vm1 = vcmp.eq.s32.totalorder %v34_v13, %v384_v15  ;;  %v520_v21 = vld [vmem:[%s683_s4 + $0x38] sm:$0xff]   ;;  %v521_v22 = vld [vmem:[%s683_s4 + $0x30] sm:$0xff]  }
   0x7   :  { %444 = vmatpush3.bf16.msra.mxu0 %v505_v2  ;;  %464 = vmatpush3.bf16.msra.mxu1 %v513_v6  ;;  %vm394_vm2 = vmpackc.low %vm39_vm1, %vm39_vm1  ;;  %v519_v20 = vld [vmem:[%s681_s2] sm:$0xff]   ;;  %v522_v23 = vld [vmem:[%s683_s4 + $0x28] sm:$0xff]  }
   0x8   :  { %445 = vmatprep.subr.bf16.mxu0 %v528_v0  ;;  %465 = vmatprep.subr.bf16.mxu1 %v528_v0  ;;  %v523_v24 = vld [vmem:[%s683_s4 + $0x20] sm:$0xff]   ;;  %v524_v25 = vld [vmem:[%s683_s4 + $0x18] sm:$0xff]   ;;  %v525_v26 = vld [vmem:[%s683_s4 + $0x10] sm:$0xff]  }
   0x9   :  { %v526_v32 = vld [vmem:[%s683_s4 + $0x8] sm:$0xff]   ;;  %v527_v33 = vld [vmem:[%s683_s4] sm:$0xff]  }
   0xa   :  { %v396_v34 = vld [vmem:[%s684_s3] ss:$0 sm:$0xff] }
   0xb   :  { %446 = vmatpush3.bf16.msra.mxu0 %v506_v3  ;;  %466 = vmatpush3.bf16.msra.mxu1 %v514_v8  ;;  %v405_v42 = vld [vmem:[%s685_s5] ss:$0 sm:$0xff] }
   0xc   :  { %447 = vmatprep.subr.bf16.mxu0 %v528_v0  ;;  %467 = vmatprep.subr.bf16.mxu1 %v528_v0 }
   0xf   :  { %448 = vmatpush3.bf16.msra.mxu0 %v507_v5  ;;  %468 = vmatpush3.bf16.msra.mxu1 %v515_v11 }
  0x10   :  { %449 = vmatprep.subr.bf16.mxu0 %v528_v0  ;;  %469 = vmatprep.subr.bf16.mxu1 %v528_v0 }
  0x13   :  { %450 = vmatpush3.bf16.msra.mxu0 %v508_v7  ;;  %470 = vmatpush3.bf16.msra.mxu1 %v516_v14 }
  0x14   :  { %451 = vmatprep.subr.bf16.mxu0 %v528_v0  ;;  %471 = vmatprep.subr.bf16.mxu1 %v528_v0 }
  0x17   :  { %452 = vmatpush3.bf16.msra.mxu0 %v509_v9  ;;  %472 = vmatpush3.bf16.msra.mxu1 %v517_v18 }
  0x18   :  { %453 = vmatprep.subr.bf16.mxu0 %v528_v0  ;;  %473 = vmatprep.subr.bf16.mxu1 %v528_v0 }
  0x1b   :  { %454 = vmatpush3.bf16.msra.mxu0 %v510_v12  ;;  %474 = vmatpush3.bf16.msra.mxu1 %v518_v19 }
  0x1c   :  { %455 = vmatprep.subr.bf16.mxu0 %v528_v0  ;;  %475 = vmatprep.subr.bf16.mxu1 %v528_v0 }
  0x1f   :  { %456 = vmatpush3.bf16.msra.mxu0 %v511_v16  ;;  %476 = vmatpush3.bf16.msra.mxu1 %v519_v20 }
  0x20   :  { %481 = vmatprep.subr.bf16.mxu0 %v528_v0 }
  0x22   :  { %458 = vmatmul.mubr.msk.bf16.vlgmr.msra.gmra.mxu0 %vm394_vm2, %v530_v17 }
  0x23   :  { %497 = vmatprep.mubr.msk.bf16.mxu0 %vm529_vm0, %v528_v0  ;;  %482 = vmatpush3.bf16.msra.mxu0 %v520_v21 }
  0x24   :  { %483 = vmatprep.subr.bf16.mxu0 %v528_v0 }
  0x27   :  { %484 = vmatpush3.bf16.msra.mxu0 %v521_v22 }
  0x28   :  { %485 = vmatprep.subr.bf16.mxu0 %v528_v0 }
  0x2b   :  { %486 = vmatpush3.bf16.msra.mxu0 %v522_v23 }
  0x2c   :  { %487 = vmatprep.subr.bf16.mxu0 %v528_v0 }
  0x2f   :  { %488 = vmatpush3.bf16.msra.mxu0 %v523_v24 }
  0x30   :  { %489 = vmatprep.subr.bf16.mxu0 %v528_v0 }
  0x33   :  { %490 = vmatpush3.bf16.msra.mxu0 %v524_v25 }
  0x34   :  { %491 = vmatprep.subr.bf16.mxu0 %v528_v0 }
  0x37   :  { %492 = vmatpush3.bf16.msra.mxu0 %v525_v26 }
  0x38   :  { %493 = vmatprep.subr.bf16.mxu0 %v528_v0 }
  0x3b   :  { %494 = vmatpush3.bf16.msra.mxu0 %v526_v32 }
  0x3c   :  { %495 = vmatprep.subr.bf16.mxu0 %v528_v0 }
  0x3f   :  { %496 = vmatpush3.bf16.msra.mxu0 %v527_v33 }
  0xe2   :  { %v142_v27 = vpop.f32.mrf.mxu0 }
  0xe3   :  { %v154_v29 = vpack.c.bf16 %v142_v27, %v142_v27 }
  0xe4   :  { %v459_v28 = vpop.f32.mrf.mxu0 }
  0xe5   :  { %478 = vmatmul.mubr.bf16.vlgmr.msra.gmra.mxu1 %v154_v29 }
  0xe6   :  { %v145_v30 = vpop.f32.mrf.mxu0 }
  0xe8   :  { %v460_v31 = vpop.f32.mrf.mxu0 }
 0x1a5   :  { %v260_v35 = vpop.f32.mrf.mxu1 }
 0x1a6   :  { %v261_v36 = vadd.f32 %v396_v34, %v260_v35 }
 0x1a7   :  { %v479_v37 = vpop.f32.mrf.mxu1 }
 0x1a8   :  { %v266_v38 = vmax.f32 %v261_v36, 0.0 }
 0x1a9   :  { %v263_v39 = vpop.f32.mrf.mxu1 }
 0x1aa   :  { %v267_v40 = vpack.c.bf16 %v266_v38, %v266_v38 }
 0x1ab   :  { %v480_v41 = vpop.f32.mrf.mxu1 }
 0x1ac   :  { %498 = vmatmul.mubr.bf16.vlgmr.msra.gmra.mxu0 %v267_v40 }
 0x26c   :  { %v373_v43 = vpop.f32.mrf.mxu0 }
 0x26d   :  { %v374_v44 = vadd.f32 %v405_v42, %v373_v43 }
 0x26e   :  { %v499_v45 = vpop.f32.mrf.mxu0 }
 0x26f   :  { %379 = vst [vmem:[%s686_s6] sm:$0xff] %v374_v44 }
 0x270   :  { %v376_v46 = vpop.f32.mrf.mxu0 }
 0x272   :  { %v500_v47 = vpop.f32.mrf.mxu0 }

</bundles_post_ra>
